<compile_context>
chip_gen: v7x
topology: tpu7x:2x2x1
jax: 0.10.0
libtpu: 0.0.40
codegen_flags: <defaults>
</compile_context>

<pallas_src>
import functools

import jax
import jax.numpy as jnp
from jax import lax
from jax.experimental import pallas as pl
from jax.experimental.pallas import tpu as pltpu

LANE = 128
TM_MAX = 2048          # rows per block -> 1 MiB f32 block per input
NSPLIT = 2             # leading "parallel" grid axis (megacore split on v7x; harmless on v5e/v6e)
EPS = 1e-7             # dice smoothing (smp-style f_score eps)
NEUTRAL_LOGIT = -100.0 # softplus(-100)=0, sigmoid(-100)=0 -> contributes exactly 0 to every sum


def _bce_dice_kernel(x_ref, t_ref, out_ref,
                     acc_bl, acc_bs, acc_pt, acc_p, acc_t,
                     *, rows, tm, tiles_per_split, need_mask):
    s = pl.program_id(0)          # parallel split
    i = pl.program_id(1)          # reduction step within the split

    @pl.when(i == 0)
    def _init():
        acc_bl[...] = jnp.zeros_like(acc_bl)
        acc_bs[...] = jnp.zeros_like(acc_bs)
        acc_pt[...] = jnp.zeros_like(acc_pt)
        acc_p[...] = jnp.zeros_like(acc_p)
        acc_t[...] = jnp.zeros_like(acc_t)

    x = x_ref[...].astype(jnp.float32)
    t = t_ref[...].astype(jnp.float32)

    if need_mask:
        # Rows at/past `rows` belong to a duplicate / padded edge block: replace the inputs
        # with neutral values so every accumulated quantity is exactly 0 there.
        row0 = (s * tiles_per_split + i) * tm
        ridx = row0 + lax.broadcasted_iota(jnp.int32, (tm, LANE), 0)
        valid = ridx < rows
        x = jnp.where(valid, x, NEUTRAL_LOGIT)
        t = jnp.where(valid, t, 0.0)

    # One exp per element, reused for softplus and sigmoid (single EUP slot is precious).
    e = jnp.exp(-jnp.abs(x))                       # exp(-|x|) in (0, 1]
    sp_pos = jnp.maximum(x, 0.0) + jnp.log1p(e)    # softplus(x)   (numerically stable)
    sp_neg = sp_pos - x                            # softplus(-x)
    inv = 1.0 / (1.0 + e)
    p = jnp.where(x >= 0.0, inv, e * inv)          # sigmoid(x), no overflow anywhere

    # BCEWithLogits elementwise
    bce_logits = sp_pos - x * t
    # BCELoss(sigmoid(x), t) with torch's clamp of log at -100
    bce_sig = t * jnp.minimum(sp_neg, 100.0) + (1.0 - t) * jnp.minimum(sp_pos, 100.0)

    # Pure per-lane VPU accumulation; no cross-lane/sublane reductions in the hot loop.
    acc_bl[...] += bce_logits
    acc_bs[...] += bce_sig
    acc_pt[...] += p * t
    acc_p[...] += p
    acc_t[...] += t

    @pl.when(i == pl.num_programs(1) - 1)
    def _finalize():
        def r8(a):  # (tm, LANE) -> (8, LANE): sublane-group partial sums (vreg adds only)
            return jnp.sum(a.reshape(tm // 8, 8, LANE), axis=0)
        out_ref[0, 0] = r8(acc_bl[...])
        out_ref[0, 1] = r8(acc_bs[...])
        out_ref[0, 2] = r8(acc_pt[...])
        out_ref[0, 3] = r8(acc_p[...])
        out_ref[0, 4] = r8(acc_t[...])


def bce_and_dice_loss(inputs, targets):
    """inputs/targets: any shape, logits / {0,1} targets (any float dtype). Returns scalar f32."""
    n_elems = inputs.size
    x = inputs.reshape(-1)
    t = targets.reshape(-1)

    # Lane-dense 2D view; only a (rare) ragged tail is padded, with neutral values.
    pad = (-n_elems) % (8 * LANE)
    if pad:
        x = jnp.concatenate([x, jnp.full((pad,), NEUTRAL_LOGIT, x.dtype)])
        t = jnp.concatenate([t, jnp.zeros((pad,), t.dtype)])
    rows = (n_elems + pad) // LANE
    x2 = x.reshape(rows, LANE)
    t2 = t.reshape(rows, LANE)

    tm = min(TM_MAX, rows)                      # rows is a multiple of 8, so tm is too
    total_tiles = pl.cdiv(rows, tm)
    tiles_per_split = pl.cdiv(total_tiles, NSPLIT)
    need_mask = (NSPLIT * tiles_per_split * tm) != rows

    def in_map(s, i):
        # Clamp so duplicate (fully-masked) blocks never index out of range.
        return (jnp.minimum(s * tiles_per_split + i, total_tiles - 1), 0)

    # NOTE: shapes are static per call, so a new input size recompiles anyway (grid depends on it).
    kernel = functools.partial(_bce_dice_kernel, rows=rows, tm=tm,
                               tiles_per_split=tiles_per_split, need_mask=need_mask)

    partials = pl.pallas_call(
        kernel,
        out_shape=jax.ShapeDtypeStruct((NSPLIT, 5, 8, LANE), jnp.float32),
        grid_spec=pltpu.PrefetchScalarGridSpec(
            num_scalar_prefetch=0,
            grid=(NSPLIT, tiles_per_split),
            in_specs=[
                pl.BlockSpec((tm, LANE), in_map),
                pl.BlockSpec((tm, LANE), in_map),
            ],
            out_specs=pl.BlockSpec((1, 5, 8, LANE), lambda s, i: (s, 0, 0, 0)),
            scratch_shapes=[pltpu.VMEM((tm, LANE), jnp.float32)] * 5,
        ),
        compiler_params=pltpu.CompilerParams(
            dimension_semantics=("parallel", "arbitrary")),
    )(x2, t2)

    # Tiny finalize in plain JAX: combine per-split / per-lane partials, then dice + BCE branch.
    sums = jnp.sum(partials, axis=(0, 2, 3), dtype=jnp.float32)   # (5,)
    n = jnp.float32(n_elems)
    b_log = sums[0] / n
    b_sig = sums[1] / n
    dice = 1.0 - (2.0 * sums[2] + EPS) / (sums[3] + sums[4] + EPS)
    b = jnp.where(b_log > 1.5, b_sig, b_log)
    return b + dice


def _reference(inputs, targets):
    x = inputs.reshape(-1).astype(jnp.float32)
    t = targets.reshape(-1).astype(jnp.float32)
    sp_pos = jnp.maximum(x, 0.0) + jnp.log1p(jnp.exp(-jnp.abs(x)))
    sp_neg = sp_pos - x
    b_log = jnp.mean(sp_pos - x * t)
    b_sig = jnp.mean(t * jnp.minimum(sp_neg, 100.0) + (1 - t) * jnp.minimum(sp_pos, 100.0))
    p = jax.nn.sigmoid(x)
    dice = 1.0 - (2.0 * jnp.sum(p * t) + EPS) / (jnp.sum(p) + jnp.sum(t) + EPS)
    b = jnp.where(b_log > 1.5, b_sig, b_log)
    return b + dice


if __name__ == "__main__":
    key = jax.random.PRNGKey(0)
    kx, kt = jax.random.split(key)

    # NCHW, small shapes
    x = jax.random.normal(kx, (2, 4, 16, 16), dtype=jnp.float32) * 2.0      # logits
    t = (jax.random.uniform(kt, (2, 4, 16, 16)) > 0.5).astype(jnp.float32)  # binary targets
    loss = jax.block_until_ready(bce_and_dice_loss(x, t))
    ref = jax.block_until_ready(_reference(x, t))
    assert jnp.allclose(loss, ref, rtol=1e-5, atol=1e-5), (loss, ref)

    # Ragged size: exercises the neutral tail pad + in-kernel row mask path.
    kx2, kt2 = jax.random.split(kt)
    x2 = jax.random.normal(kx2, (3, 4, 16, 24), dtype=jnp.float32) * 3.0
    t2 = (jax.random.uniform(kt2, (3, 4, 16, 24)) > 0.5).astype(jnp.float32)
    loss2 = jax.block_until_ready(bce_and_dice_loss(x2, t2))
    ref2 = jax.block_until_ready(_reference(x2, t2))
    assert jnp.allclose(loss2, ref2, rtol=1e-5, atol=1e-5), (loss2, ref2)

    print("KERNEL_OK")
</pallas_src>

<mosaic_0001>
module attributes {stable_mosaic.version = 11 : i64} {
  func.func @_bce_dice_kernel(%arg0: i32, %arg1: i32, %arg2: memref<16x128xf32, #tpu.memory_space<vmem>>, %arg3: memref<16x128xf32, #tpu.memory_space<vmem>>, %arg4: memref<1x5x8x128xf32, #tpu.memory_space<vmem>>, %arg5: memref<16x128xf32, #tpu.memory_space<vmem>>, %arg6: memref<16x128xf32, #tpu.memory_space<vmem>>, %arg7: memref<16x128xf32, #tpu.memory_space<vmem>>, %arg8: memref<16x128xf32, #tpu.memory_space<vmem>>, %arg9: memref<16x128xf32, #tpu.memory_space<vmem>>) attributes {dimension_semantics = [#tpu.dimension_semantics<parallel>, #tpu.dimension_semantics<arbitrary>], iteration_bounds = array<i64: 2, 1>, scalar_prefetch = 0 : i64, scratch_operands = 5 : i64, tpu.core_type = #tpu.core_type<tc>, window_params = [{transform_indices = @transform_0, window_bounds = array<i64: 16, 128>}, {transform_indices = @transform_1, window_bounds = array<i64: 16, 128>}, {transform_indices = @transform_2, window_bounds = array<i64: 1, 5, 8, 128>}]} {
    %c0_i32 = arith.constant 0 : i32
    %0 = arith.cmpi eq, %arg1, %c0_i32 : i32
    %1 = arith.extui %0 : i1 to i32
    %c0_i32_0 = arith.constant 0 : i32
    %2 = arith.cmpi ne, %1, %c0_i32_0 : i32
    scf.if %2 {
      %cst_36 = arith.constant 0.000000e+00 : f32
      %64 = vector.broadcast %cst_36 : f32 to vector<16x128xf32>
      %c0_37 = arith.constant 0 : index
      %c0_38 = arith.constant 0 : index
      %65 = vector.load %arg5[%c0_37, %c0_38] : memref<16x128xf32, #tpu.memory_space<vmem>>, vector<16x128xf32>
      tpu.vector_store %arg5[%c0_37, %c0_38], %64 {strides = array<i32>} : memref<16x128xf32, #tpu.memory_space<vmem>>, vector<16x128xf32>,
      %cst_39 = arith.constant 0.000000e+00 : f32
      %66 = vector.broadcast %cst_39 : f32 to vector<16x128xf32>
      %c0_40 = arith.constant 0 : index
      %c0_41 = arith.constant 0 : index
      %67 = vector.load %arg6[%c0_40, %c0_41] : memref<16x128xf32, #tpu.memory_space<vmem>>, vector<16x128xf32>
      tpu.vector_store %arg6[%c0_40, %c0_41], %66 {strides = array<i32>} : memref<16x128xf32, #tpu.memory_space<vmem>>, vector<16x128xf32>,
      %cst_42 = arith.constant 0.000000e+00 : f32
      %68 = vector.broadcast %cst_42 : f32 to vector<16x128xf32>
      %c0_43 = arith.constant 0 : index
      %c0_44 = arith.constant 0 : index
      %69 = vector.load %arg7[%c0_43, %c0_44] : memref<16x128xf32, #tpu.memory_space<vmem>>, vector<16x128xf32>
      tpu.vector_store %arg7[%c0_43, %c0_44], %68 {strides = array<i32>} : memref<16x128xf32, #tpu.memory_space<vmem>>, vector<16x128xf32>,
      %cst_45 = arith.constant 0.000000e+00 : f32
      %70 = vector.broadcast %cst_45 : f32 to vector<16x128xf32>
      %c0_46 = arith.constant 0 : index
      %c0_47 = arith.constant 0 : index
      %71 = vector.load %arg8[%c0_46, %c0_47] : memref<16x128xf32, #tpu.memory_space<vmem>>, vector<16x128xf32>
      tpu.vector_store %arg8[%c0_46, %c0_47], %70 {strides = array<i32>} : memref<16x128xf32, #tpu.memory_space<vmem>>, vector<16x128xf32>,
      %cst_48 = arith.constant 0.000000e+00 : f32
      %72 = vector.broadcast %cst_48 : f32 to vector<16x128xf32>
      %c0_49 = arith.constant 0 : index
      %c0_50 = arith.constant 0 : index
      %73 = vector.load %arg9[%c0_49, %c0_50] : memref<16x128xf32, #tpu.memory_space<vmem>>, vector<16x128xf32>
      tpu.vector_store %arg9[%c0_49, %c0_50], %72 {strides = array<i32>} : memref<16x128xf32, #tpu.memory_space<vmem>>, vector<16x128xf32>,
    } else {
    }
    %c0 = arith.constant 0 : index
    %c0_1 = arith.constant 0 : index
    %3 = vector.load %arg2[%c0, %c0_1] : memref<16x128xf32, #tpu.memory_space<vmem>>, vector<16x128xf32>
    %c0_2 = arith.constant 0 : index
    %c0_3 = arith.constant 0 : index
    %4 = vector.load %arg3[%c0_2, %c0_3] : memref<16x128xf32, #tpu.memory_space<vmem>>, vector<16x128xf32>
    %c1_i32 = arith.constant 1 : i32
    %5 = arith.muli %arg0, %c1_i32 : i32
    %6 = arith.addi %5, %arg1 : i32
    %c16_i32 = arith.constant 16 : i32
    %7 = arith.muli %6, %c16_i32 : i32
    %8 = tpu.iota {dimensions = array<i32: 0>} : vector<16x128xi32>
    %9 = vector.broadcast %7 : i32 to vector<16x128xi32>
    %10 = arith.addi %9, %8 : vector<16x128xi32>
    %c16_i32_4 = arith.constant 16 : i32
    %11 = vector.broadcast %c16_i32_4 : i32 to vector<16x128xi32>
    %12 = arith.cmpi slt, %10, %11 : vector<16x128xi32>
    %cst = arith.constant -1.000000e+02 : f32
    %13 = vector.broadcast %cst : f32 to vector<16x128xf32>
    %14 = arith.select %12, %3, %13 : vector<16x128xi1>, vector<16x128xf32>
    %cst_5 = arith.constant 0.000000e+00 : f32
    %15 = vector.broadcast %cst_5 : f32 to vector<16x128xf32>
    %16 = arith.select %12, %4, %15 : vector<16x128xi1>, vector<16x128xf32>
    %17 = math.absf %14 : vector<16x128xf32>
    %cst_6 = arith.constant 0.000000e+00 : f32
    %18 = vector.broadcast %cst_6 : f32 to vector<16x128xf32>
    %19 = arith.subf %18, %17 : vector<16x128xf32>
    %20 = math.exp %19 : vector<16x128xf32>
    %cst_7 = arith.constant 0.000000e+00 : f32
    %21 = vector.broadcast %cst_7 : f32 to vector<16x128xf32>
    %22 = arith.maximumf %14, %21 : vector<16x128xf32>
    %23 = math.log1p %20 : vector<16x128xf32>
    %24 = arith.addf %22, %23 : vector<16x128xf32>
    %25 = arith.subf %24, %14 : vector<16x128xf32>
    %cst_8 = arith.constant 1.000000e+00 : f32
    %26 = vector.broadcast %cst_8 : f32 to vector<16x128xf32>
    %27 = arith.addf %26, %20 : vector<16x128xf32>
    %cst_9 = arith.constant 1.000000e+00 : f32
    %28 = vector.broadcast %cst_9 : f32 to vector<16x128xf32>
    %29 = arith.divf %28, %27 : vector<16x128xf32>
    %cst_10 = arith.constant 0.000000e+00 : f32
    %30 = vector.broadcast %cst_10 : f32 to vector<16x128xf32>
    %31 = arith.cmpf oge, %14, %30 : vector<16x128xf32>
    %32 = arith.mulf %20, %29 : vector<16x128xf32>
    %33 = arith.select %31, %29, %32 : vector<16x128xi1>, vector<16x128xf32>
    %34 = arith.mulf %14, %16 : vector<16x128xf32>
    %35 = arith.subf %24, %34 : vector<16x128xf32>
    %cst_11 = arith.constant 1.000000e+02 : f32
    %36 = vector.broadcast %cst_11 : f32 to vector<16x128xf32>
    %37 = arith.minimumf %25, %36 : vector<16x128xf32>
    %38 = arith.mulf %16, %37 : vector<16x128xf32>
    %cst_12 = arith.constant 1.000000e+00 : f32
    %39 = vector.broadcast %cst_12 : f32 to vector<16x128xf32>
    %40 = arith.subf %39, %16 : vector<16x128xf32>
    %cst_13 = arith.constant 1.000000e+02 : f32
    %41 = vector.broadcast %cst_13 : f32 to vector<16x128xf32>
    %42 = arith.minimumf %24, %41 : vector<16x128xf32>
    %43 = arith.mulf %40, %42 : vector<16x128xf32>
    %44 = arith.addf %38, %43 : vector<16x128xf32>
    %c0_14 = arith.constant 0 : index
    %c0_15 = arith.constant 0 : index
    %45 = vector.load %arg5[%c0_14, %c0_15] : memref<16x128xf32, #tpu.memory_space<vmem>>, vector<16x128xf32>
    %46 = arith.addf %45, %35 : vector<16x128xf32>
    %c0_16 = arith.constant 0 : index
    %c0_17 = arith.constant 0 : index
    %47 = vector.load %arg5[%c0_16, %c0_17] : memref<16x128xf32, #tpu.memory_space<vmem>>, vector<16x128xf32>
    tpu.vector_store %arg5[%c0_16, %c0_17], %46 {strides = array<i32>} : memref<16x128xf32, #tpu.memory_space<vmem>>, vector<16x128xf32>,
    %c0_18 = arith.constant 0 : index
    %c0_19 = arith.constant 0 : index
    %48 = vector.load %arg6[%c0_18, %c0_19] : memref<16x128xf32, #tpu.memory_space<vmem>>, vector<16x128xf32>
    %49 = arith.addf %48, %44 : vector<16x128xf32>
    %c0_20 = arith.constant 0 : index
    %c0_21 = arith.constant 0 : index
    %50 = vector.load %arg6[%c0_20, %c0_21] : memref<16x128xf32, #tpu.memory_space<vmem>>, vector<16x128xf32>
    tpu.vector_store %arg6[%c0_20, %c0_21], %49 {strides = array<i32>} : memref<16x128xf32, #tpu.memory_space<vmem>>, vector<16x128xf32>,
    %c0_22 = arith.constant 0 : index
    %c0_23 = arith.constant 0 : index
    %51 = vector.load %arg7[%c0_22, %c0_23] : memref<16x128xf32, #tpu.memory_space<vmem>>, vector<16x128xf32>
    %52 = arith.mulf %33, %16 : vector<16x128xf32>
    %53 = arith.addf %51, %52 : vector<16x128xf32>
    %c0_24 = arith.constant 0 : index
    %c0_25 = arith.constant 0 : index
    %54 = vector.load %arg7[%c0_24, %c0_25] : memref<16x128xf32, #tpu.memory_space<vmem>>, vector<16x128xf32>
    tpu.vector_store %arg7[%c0_24, %c0_25], %53 {strides = array<i32>} : memref<16x128xf32, #tpu.memory_space<vmem>>, vector<16x128xf32>,
    %c0_26 = arith.constant 0 : index
    %c0_27 = arith.constant 0 : index
    %55 = vector.load %arg8[%c0_26, %c0_27] : memref<16x128xf32, #tpu.memory_space<vmem>>, vector<16x128xf32>
    %56 = arith.addf %55, %33 : vector<16x128xf32>
    %c0_28 = arith.constant 0 : index
    %c0_29 = arith.constant 0 : index
    %57 = vector.load %arg8[%c0_28, %c0_29] : memref<16x128xf32, #tpu.memory_space<vmem>>, vector<16x128xf32>
    tpu.vector_store %arg8[%c0_28, %c0_29], %56 {strides = array<i32>} : memref<16x128xf32, #tpu.memory_space<vmem>>, vector<16x128xf32>,
    %c0_30 = arith.constant 0 : index
    %c0_31 = arith.constant 0 : index
    %58 = vector.load %arg9[%c0_30, %c0_31] : memref<16x128xf32, #tpu.memory_space<vmem>>, vector<16x128xf32>
    %59 = arith.addf %58, %16 : vector<16x128xf32>
    %c0_32 = arith.constant 0 : index
    %c0_33 = arith.constant 0 : index
    %60 = vector.load %arg9[%c0_32, %c0_33] : memref<16x128xf32, #tpu.memory_space<vmem>>, vector<16x128xf32>
    tpu.vector_store %arg9[%c0_32, %c0_33], %59 {strides = array<i32>} : memref<16x128xf32, #tpu.memory_space<vmem>>, vector<16x128xf32>,
    %c0_i32_34 = arith.constant 0 : i32
    %61 = arith.cmpi eq, %arg1, %c0_i32_34 : i32
    %62 = arith.extui %61 : i1 to i32
    %c0_i32_35 = arith.constant 0 : i32
    %63 = arith.cmpi ne, %62, %c0_i32_35 : i32
    scf.if %63 {
      %c0_36 = arith.constant 0 : index
      %c0_37 = arith.constant 0 : index
      %64 = vector.load %arg5[%c0_36, %c0_37] : memref<16x128xf32, #tpu.memory_space<vmem>>, vector<16x128xf32>
      %65 = vector.shape_cast %64 : vector<16x128xf32> to vector<2x8x128xf32>
      %cst_38 = arith.constant dense<0.000000e+00> : vector<8x128xf32>
      %66 = vector.multi_reduction <add>, %65, %cst_38 [0] : vector<2x8x128xf32> to vector<8x128xf32>
      %c0_39 = arith.constant 0 : index
      %c0_40 = arith.constant 0 : index
      %c0_41 = arith.constant 0 : index
      %c0_42 = arith.constant 0 : index
      %67 = vector.load %arg4[%c0_39, %c0_40, %c0_41, %c0_42] : memref<1x5x8x128xf32, #tpu.memory_space<vmem>>, vector<1x1x8x128xf32>
      %68 = vector.shape_cast %67 : vector<1x1x8x128xf32> to vector<8x128xf32>
      %69 = vector.shape_cast %66 : vector<8x128xf32> to vector<1x1x8x128xf32>
      tpu.vector_store %arg4[%c0_39, %c0_40, %c0_41, %c0_42], %69 {strides = array<i32>} : memref<1x5x8x128xf32, #tpu.memory_space<vmem>>, vector<1x1x8x128xf32>,
      %c0_43 = arith.constant 0 : index
      %c0_44 = arith.constant 0 : index
      %70 = vector.load %arg6[%c0_43, %c0_44] : memref<16x128xf32, #tpu.memory_space<vmem>>, vector<16x128xf32>
      %71 = vector.shape_cast %70 : vector<16x128xf32> to vector<2x8x128xf32>
      %cst_45 = arith.constant dense<0.000000e+00> : vector<8x128xf32>
      %72 = vector.multi_reduction <add>, %71, %cst_45 [0] : vector<2x8x128xf32> to vector<8x128xf32>
      %c0_46 = arith.constant 0 : index
      %c1 = arith.constant 1 : index
      %c0_47 = arith.constant 0 : index
      %c0_48 = arith.constant 0 : index
      %73 = vector.load %arg4[%c0_46, %c1, %c0_47, %c0_48] : memref<1x5x8x128xf32, #tpu.memory_space<vmem>>, vector<1x1x8x128xf32>
      %74 = vector.shape_cast %73 : vector<1x1x8x128xf32> to vector<8x128xf32>
      %75 = vector.shape_cast %72 : vector<8x128xf32> to vector<1x1x8x128xf32>
      tpu.vector_store %arg4[%c0_46, %c1, %c0_47, %c0_48], %75 {strides = array<i32>} : memref<1x5x8x128xf32, #tpu.memory_space<vmem>>, vector<1x1x8x128xf32>,
      %c0_49 = arith.constant 0 : index
      %c0_50 = arith.constant 0 : index
      %76 = vector.load %arg7[%c0_49, %c0_50] : memref<16x128xf32, #tpu.memory_space<vmem>>, vector<16x128xf32>
      %77 = vector.shape_cast %76 : vector<16x128xf32> to vector<2x8x128xf32>
      %cst_51 = arith.constant dense<0.000000e+00> : vector<8x128xf32>
      %78 = vector.multi_reduction <add>, %77, %cst_51 [0] : vector<2x8x128xf32> to vector<8x128xf32>
      %c0_52 = arith.constant 0 : index
      %c2 = arith.constant 2 : index
      %c0_53 = arith.constant 0 : index
      %c0_54 = arith.constant 0 : index
      %79 = vector.load %arg4[%c0_52, %c2, %c0_53, %c0_54] : memref<1x5x8x128xf32, #tpu.memory_space<vmem>>, vector<1x1x8x128xf32>
      %80 = vector.shape_cast %79 : vector<1x1x8x128xf32> to vector<8x128xf32>
      %81 = vector.shape_cast %78 : vector<8x128xf32> to vector<1x1x8x128xf32>
      tpu.vector_store %arg4[%c0_52, %c2, %c0_53, %c0_54], %81 {strides = array<i32>} : memref<1x5x8x128xf32, #tpu.memory_space<vmem>>, vector<1x1x8x128xf32>,
      %c0_55 = arith.constant 0 : index
      %c0_56 = arith.constant 0 : index
      %82 = vector.load %arg8[%c0_55, %c0_56] : memref<16x128xf32, #tpu.memory_space<vmem>>, vector<16x128xf32>
      %83 = vector.shape_cast %82 : vector<16x128xf32> to vector<2x8x128xf32>
      %cst_57 = arith.constant dense<0.000000e+00> : vector<8x128xf32>
      %84 = vector.multi_reduction <add>, %83, %cst_57 [0] : vector<2x8x128xf32> to vector<8x128xf32>
      %c0_58 = arith.constant 0 : index
      %c3 = arith.constant 3 : index
      %c0_59 = arith.constant 0 : index
      %c0_60 = arith.constant 0 : index
      %85 = vector.load %arg4[%c0_58, %c3, %c0_59, %c0_60] : memref<1x5x8x128xf32, #tpu.memory_space<vmem>>, vector<1x1x8x128xf32>
      %86 = vector.shape_cast %85 : vector<1x1x8x128xf32> to vector<8x128xf32>
      %87 = vector.shape_cast %84 : vector<8x128xf32> to vector<1x1x8x128xf32>
      tpu.vector_store %arg4[%c0_58, %c3, %c0_59, %c0_60], %87 {strides = array<i32>} : memref<1x5x8x128xf32, #tpu.memory_space<vmem>>, vector<1x1x8x128xf32>,
      %c0_61 = arith.constant 0 : index
      %c0_62 = arith.constant 0 : index
      %88 = vector.load %arg9[%c0_61, %c0_62] : memref<16x128xf32, #tpu.memory_space<vmem>>, vector<16x128xf32>
      %89 = vector.shape_cast %88 : vector<16x128xf32> to vector<2x8x128xf32>
      %cst_63 = arith.constant dense<0.000000e+00> : vector<8x128xf32>
      %90 = vector.multi_reduction <add>, %89, %cst_63 [0] : vector<2x8x128xf32> to vector<8x128xf32>
      %c0_64 = arith.constant 0 : index
      %c4 = arith.constant 4 : index
      %c0_65 = arith.constant 0 : index
      %c0_66 = arith.constant 0 : index
      %91 = vector.load %arg4[%c0_64, %c4, %c0_65, %c0_66] : memref<1x5x8x128xf32, #tpu.memory_space<vmem>>, vector<1x1x8x128xf32>
      %92 = vector.shape_cast %91 : vector<1x1x8x128xf32> to vector<8x128xf32>
      %93 = vector.shape_cast %90 : vector<8x128xf32> to vector<1x1x8x128xf32>
      tpu.vector_store %arg4[%c0_64, %c4, %c0_65, %c0_66], %93 {strides = array<i32>} : memref<1x5x8x128xf32, #tpu.memory_space<vmem>>, vector<1x1x8x128xf32>,
    } else {
    }
    return
  }
  func.func @transform_0(%arg0: i32, %arg1: i32) -> (i32, i32) {
    %c1_i32 = arith.constant 1 : i32
    %0 = arith.muli %arg0, %c1_i32 : i32
    %1 = arith.addi %0, %arg1 : i32
    %c0_i32 = arith.constant 0 : i32
    %2 = arith.minsi %1, %c0_i32 : i32
    %c0_i32_0 = arith.constant 0 : i32
    %c0_i32_1 = arith.constant 0 : i32
    return %2, %c0_i32_0 : i32, i32
  }
  func.func @transform_1(%arg0: i32, %arg1: i32) -> (i32, i32) {
    %c1_i32 = arith.constant 1 : i32
    %0 = arith.muli %arg0, %c1_i32 : i32
    %1 = arith.addi %0, %arg1 : i32
    %c0_i32 = arith.constant 0 : i32
    %2 = arith.minsi %1, %c0_i32 : i32
    %c0_i32_0 = arith.constant 0 : i32
    %c0_i32_1 = arith.constant 0 : i32
    return %2, %c0_i32_0 : i32, i32
  }
  func.func @transform_2(%arg0: i32, %arg1: i32) -> (i32, i32, i32, i32) {
    %c0_i32 = arith.constant 0 : i32
    %c0_i32_0 = arith.constant 0 : i32
    %c0_i32_1 = arith.constant 0 : i32
    %c0_i32_2 = arith.constant 0 : i32
    return %arg0, %c0_i32, %c0_i32_0, %c0_i32_1 : i32, i32, i32, i32
  }
}

</mosaic_0001>

<bundles_post_ra>
// kernel: tpu_custom_call.1
= control target key start
LH: loop header
LB: loop body
LE: loop exit
PB: predicated region body
PF: predicated region fallthrough
CT: control target
= control target key end

     0   :  { %7 = vsyncpa [#allocation8], 0  ;;  %s1078_s0 = inlined_call_operand.hbm [shape: f32[16,128], index: 0, kind: input, shape index: {}]   ;;  %s1079_s1 = inlined_call_operand.hbm [shape: f32[16,128], index: 1, kind: input, shape index: {}]   ;;  %s1080_s2 = inlined_call_operand.hbm [shape: f32[2,5,8,128], index: 2, kind: output, shape index: {}]  }
   0x1   :  { %9 = vsyncpa [#allocation8 + $0x1], 0 }
   0x2   :  { %10 = vsyncpa [#allocation11], 0 }
   0x3   :  { %12 = vsyncpa [#allocation11 + $0x1], 0 }
   0x4   :  { %13 = vsyncpa [#allocation9], 0 }
   0x5   :  { %15 = vsyncpa [#allocation9 + $0x1], 0  ;;  %s832_s9 = smov 0   ;;  %s834_s10 = smov 0  }
   0x6   :  { %s836_s11 = smov 0   ;;  %s838_s12 = smov 0  }
   0x7   :  { %s840_s13 = smov 0   ;;  %s842_s14 = smov 0  }
   0x8   :  { %s844_s15 = smov 0   ;;  %s846_s16 = smov 0  }
   0x9 LB: > { %s509_s17 = sadd.s32 4294967295, %s808_s16   ;;  %s510_s18 = sadd.s32 4294967294, %s808_s16   ;;  %s808_s16 = sphi %s846_s16, %s21_s16   ;;  %s804_s15 = sphi %s844_s15, %s1101_s15   ;;  %s800_s14 = sphi %s842_s14, %s1100_s14   ;;  %s796_s13 = sphi %s840_s13, %s1068_s13   ;;  %s792_s12 = sphi %s838_s12, %s1099_s12   ;;  %s788_s11 = sphi %s836_s11, %s1098_s11   ;;  %s784_s10 = sphi %s834_s10, %s1097_s10   ;;  %s780_s9 = sphi %s832_s9, %s1096_s9  }
   0xa   : > { %s33_s19 = sadd.s32 1, %s804_s15  ;;  %p777_p1 = scmp.ne.s32.totalorder %s796_s13, 0 }
   0xb   : > { %p35_p0 = scmp.ge.s32.totalorder %s33_s19, 2  ;;  %p54_p2 = scmp.eq.s32.totalorder %s808_s16, 0 }
   0xc   : > { %p59_p3 = scmp.ne.s32.totalorder %s796_s13, %s792_s12  ;;  %p60_p5 = scmp.eq.s32.totalorder %s509_s17, 0 }
   0xd   : > { %s1103_s19 = smov (%p35_p0, %s33_s19), 0  ;;  %p878_p4 = por %p777_p1, %p54_p2 }
   0xe   : > { %p882_p6 = por %p60_p5, %p59_p3  ;;  %s101_s22 = ssub.s32 %s804_s15, %s1103_s19 }
   0xf   : > { %p102_p7 = scmp.eq.s32.totalorder %s101_s22, 0  ;;  %s104_s23 = sadd.s32 1, %s788_s11 }
  0x10   : > { %s1084_s21 = scalar_select %p882_p6, 1, 0 }
  0x11   : > { %s890_s24 = scalar_select %p102_p7, %s788_s11, %s104_s23  }
  0x12   : > { %p114_p8 = scmp.ne.s32.totalorder %s788_s11, %s784_s10  ;;  %p115_p9 = scmp.eq.s32.totalorder %s509_s17, 1 }
  0x13   : > { %p120_p10 = scmp.ne.s32.totalorder %s784_s10, %s780_s9  ;;  %p121_p11 = scmp.eq.s32.totalorder %s510_s18, 1 }
  0x14   : > { %p896_p12 = por %p115_p9, %p114_p8  ;;  %p551_p1 = scmp.lt.s32.totalorder %s808_s16, 2 }
  0x15   : > { %p901_p0 = por %p121_p11, %p120_p10  ;;  %s810_s27 = smov [#allocation7]  }
  0x16   : > { %s1085_s25 = scalar_select %p896_p12, 1, 0 }
  0x17   : > { %s1086_s26 = scalar_select %p901_p0, 1, 0 }
  0x18   : > { %s155_s28 = sshll.u32 %s810_s27, 4  ;;  %p908_p2 = pnand %p551_p1, %p878_p4  ;;  %s156_s28 = int_to_ptr.vmem [resolvable:$true] %s155_s28 }
  0x19   : > { %s641_s4 = scalar_lea.hbm %s1078_s0, 256 }
  0x1a   : > { %p642_p3 = scmp.ne.s32.totalorder %s1078_s0, %s641_s4  ;;  %p643_p5 = pneg %p908_p2 }
  0x1b   : > { %p648_p8 = scmp.lt.u32.totalorder %s641_s4, %s641_s4  ;;  %p650_p9 = scmp.lt.u32.totalorder %s641_s4, %s1078_s0 }
  0x1c   : > { %p644_p7 = pnand %p643_p5, %p642_p3 }
  0x1d   : > { %p651_p10 = por %p650_p9, %p648_p8 }
  0x1e   : > { %p645_p4 = pneg %p644_p7 }
  0x20   : > { %p652_p11 = pnand %p651_p10, %p645_p4 }
  0x22   : > { %655 = shalt.err (!%p652_p11)
}
  0x23   : > { %s656_s12 = scalar_lea.vmem %s156_s28, 256  ;;  %s663_s17 = scalar_lea.vmem %s156_s28, 512 }
  0x24   : > { %p657_p1 = scmp.ne.s32.totalorder %s156_s28, %s656_s12  ;;  %p664_p12 = scmp.lt.s32.totalorder %s156_s28, %s156_s28 }
  0x25   : > { %p665_p6 = scmp.lt.s32.totalorder %s663_s17, %s656_s12 }
  0x26   : > { %p659_p13 = pnand %p657_p1, %p643_p5 }
  0x27   : > { %p666_p3 = por %p665_p6, %p664_p12 }
  0x28   : > { %p660_p0 = pneg %p659_p13 }
  0x2a   : > { %p667_p7 = pnand %p666_p3, %p660_p0 }
  0x2c   : > { %670 = shalt.err (!%p667_p7)
}
  0x2d   : > { %s811_s18 = smov 128   ;;  %s812_s20 = smov 8  }
  0x2e   : > { %543 = dma.hbm_to_vmem [thread:$0]  (!%p908_p2), %s1078_s0, 256, %s156_s28, [#allocation8], %s811_s18, %s811_s18, %s812_s20  }
  0x2f   : > { %p519_p13 = scmp.ge.s32.totalorder %s808_s16, 1  ;;  %p187_p4 = scmp.lt.s32.totalorder %s808_s16, 3 }
  0x30   : > { %s813_s30 = smov [#allocation10]   ;;  %s671_s6 = scalar_lea.hbm %s1079_s1, 256 }
  0x31   : > { %p939_p8 = pnand %p519_p13, %p187_p4  ;;  %s179_s3 = sshll.u32 %s813_s30, 4  ;;  %s180_s3 = int_to_ptr.vmem [resolvable:$true] %s179_s3 }
  0x32   : > { %p672_p6 = scmp.ne.s32.totalorder %s1079_s1, %s671_s6  ;;  %p678_p9 = scmp.lt.u32.totalorder %s671_s6, %s671_s6 }
  0x33   : > { %s1088_s27 = scalar_select %p939_p8, 1, 0 }
  0x34   : > { %p674_p12 = pnand %p672_p6, %p643_p5  ;;  %p680_p10 = scmp.lt.u32.totalorder %s671_s6, %s1079_s1 }
  0x36   : > { %p675_p0 = pneg %p674_p12  ;;  %p681_p11 = por %p680_p10, %p678_p9 }
  0x38   : > { %p682_p1 = pnand %p681_p11, %p675_p0 }
  0x3a   : > { %685 = shalt.err (!%p682_p1)
}
  0x3b   : > { %s686_s17 = scalar_lea.vmem %s180_s3, 256  ;;  %s693_s22 = scalar_lea.vmem %s180_s3, 512 }
  0x3c   : > { %p687_p3 = scmp.ne.s32.totalorder %s180_s3, %s686_s17  ;;  %p694_p4 = scmp.lt.s32.totalorder %s180_s3, %s180_s3 }
  0x3d   : > { %p695_p8 = scmp.lt.s32.totalorder %s693_s22, %s686_s17 }
  0x3e   : > { %p689_p7 = pnand %p687_p3, %p643_p5 }
  0x3f   : > { %p696_p6 = por %p695_p8, %p694_p4 }
  0x40   : > { %p690_p13 = pneg %p689_p7 }
  0x42   : > { %p697_p12 = pnand %p696_p6, %p690_p13 }
  0x44   : > { %700 = shalt.err (!%p697_p12)
}
  0x45   : > { %546 = dma.hbm_to_vmem [thread:$0]  (!%p908_p2), %s1079_s1, 256, %s180_s3, [#allocation11], %s811_s18, %s811_s18, %s812_s20  }
  0x46   : > { %p1089_p0 = scmp.ne.s32.totalorder %s1088_s27, 0 }
  0x47   : > { %s193_s4 = sand.u32 (!%p1089_p0), 1, %s796_s13   ;;  %p1090_p5 = scmp.ne.s32.totalorder (!%p1089_p0), %s1084_s21, 0 }
  0x48   : > { %191 = sbr.rel (%p1089_p0) target bundleno = 152 (0x98), region = 28  ;;  %s520_s5 = sshll.u32 (!%p1089_p0), %s193_s4, 4 }
  0x49   : > { %s194_s6 = scalar_lea.sflag (!%p1089_p0), [#allocation8], %s193_s4  ;;  %s197_s7 = scalar_lea.vmem (!%p1089_p0), [#allocation7], %s520_s5 }
  0x4f   : > { %766 = dma.done.wait (%p1090_p5), %s194_s6, 256  }
  0x50   : > { %768 = vsyncadd (%p1090_p5), %s194_s6, 4294967040  ;;  %s203_s29 = scalar_lea.sflag [#allocation11], %s193_s4  ;;  %s206_s8 = scalar_lea.vmem [#allocation10], %s520_s5 }
  0x51   : > { %770 = dma.done.wait (%p1090_p5), %s203_s29, 256  }
  0x52   : > { %772 = vsyncadd (%p1090_p5), %s203_s29, 4294967040  ;;  %s522_s18 = sshll.u32 %s800_s14, 4  ;;  %v260_v0 = vlaneseq  ;;  %s229_s20 = sand.u32 1, %s784_s10   ;;  %v254_v6 = vld [vmem:[%s197_s7] sm:$0xff]  ;;  %v255_v7 = vld [vmem:[%s197_s7 + $0x8] sm:$0xff] }
  0x53   : > { %v263_v1 = vstv %s522_s18  ;;  %s532_s27 = smul.u32 40, %s229_s20  ;;  %v256_v8 = vld [vmem:[%s206_s8] sm:$0xff]  ;;  %v257_v9 = vld [vmem:[%s206_s8 + $0x8] sm:$0xff]  ;;  %s1026_s23 = scalar_lea.sflag [#allocation9], %s229_s20 }
  0x54   : > { %v261_v2 = vshrl.u32 %v260_v0, 7  ;;  %s533_s3 = smul.u32 640, %s800_s14  ;;  %p1093_p8 = scmp.ne.s32.totalorder %s1085_s25, 0 }
  0x55   : > { %s990_s21 = scalar_lea.vmem [#allocation12], %s532_s27  ;;  %s814_s30 = smov [#allocation12]  }
  0x56   : > { %v262_v3 = vadd.s32 8, %v261_v2  ;;  %v264_v4 = vadd.s32 %v263_v1, %v261_v2  ;;  %s405_s28 = sshll.u32 %s990_s21, 4  ;;  %s1021_s22 = scalar_lea.hbm %s1080_s2, %s533_s3  ;;  %s1016_s28 = int_to_ptr.vmem [resolvable:$true] %s405_s28 }
  0x57   : > { %s701_s14 = scalar_lea.vmem %s1016_s28, 640  ;;  %s705_s4 = sshll.u32 %s814_s30, 4  ;;  %s706_s4 = int_to_ptr.vmem [resolvable:$false] %s705_s4 }
  0x58   : > { %v265_v5 = vadd.s32 %v263_v1, %v262_v3  ;;  %vm266_vm0 = vcmp.lt.s32.totalorder %v264_v4, 16  ;;  %p702_p2 = scmp.ne.s32.totalorder %s1016_s28, %s701_s14  ;;  %s707_s5 = scalar_lea.vmem %s706_s4, 1280 }
  0x59   : > { %v268_v10 = vsel %vm266_vm0, %v254_v6, -100.0  ;;  %v984_v14 = vsel %vm266_vm0, %v256_v8, 0.0  ;;  %p708_p11 = scmp.lt.s32.totalorder %s1016_s28, %s706_s4  ;;  %p709_p1 = scmp.lt.s32.totalorder %s707_s5, %s701_s14 }
  0x5a   : > { %vm267_vm1 = vcmp.lt.s32.totalorder %v265_v5, 16  ;;  %v272_v12 = vand.u32 2147483647, %v268_v10  ;;  %v280_v33 = vmax.f32 %v268_v10, 0.0  ;;  %v316_v41 = vmul.f32 %v984_v14, %v268_v10  ;;  %p703_p9 = pnand %p702_p2, %p1093_p8 }
  0x5b   : > { %v981_v11 = vsel %vm267_vm1, %v255_v7, -100.0  ;;  %v986_v15 = vsel %vm267_vm1, %v257_v9, 0.0  ;;  %vm310_vm4 = vcmp.ge.f32.partialorder %v268_v10, 0.0  ;;  %v324_v48 = vsub.f32 1.0, %v984_v14  ;;  %p710_p3 = por %p709_p1, %p708_p11 }
  0x5c   : > { %v273_v13 = vand.u32 2147483647, %v981_v11  ;;  %v274_v16 = vsub.f32 0.0, %v272_v12  ;;  %v388_v18 = vadd.f32 %v986_v15, %v984_v14  ;;  %v281_v37 = vmax.f32 %v981_v11, 0.0  ;;  %p704_p10 = pneg %p703_p9 }
  0x5d   : > { %v317_v44 = vmul.f32 %v986_v15, %v981_v11  ;;  %vm311_vm5 = vcmp.ge.f32.partialorder %v981_v11, 0.0  ;;  %v325_v51 = vsub.f32 1.0, %v986_v15 }
  0x5e   : > { %v275_v17 = vsub.f32 0.0, %v273_v13  ;;  %v276_v19 = vmul.f32 1.442695, %v274_v16  ;;  %526 = vst [vmem:[%s990_s21 + $0x20] sm:$0xff] %v388_v18  ;;  %p711_p7 = pnand %p710_p3, %p704_p10 }
  0x60   : > { %v278_v20 = vmul.f32 1.442695, %v275_v17  ;;  %629 = vpow2.f32 %v276_v19 }
  0x62   : > { %631 = vpow2.f32 %v278_v20 }
  0x6a   : > { %v630_v21 = vpop.eup %629 }
  0x6b   : > { %v282_v23 = vadd.f32 1.0, %v630_v21  ;;  %v285_v25 = vmul.f32 -0.5, %v630_v21  ;;  %v288_v28 = vand.u32 2147483647, %v630_v21 }
  0x6c   : > { %v632_v22 = vpop.eup %631 }
  0x6d   : > { %v291_v24 = vadd.f32 1.0, %v632_v22  ;;  %633 = vlog2.f32 %v282_v23  ;;  %v294_v26 = vmul.f32 -0.5, %v632_v22  ;;  %v286_v27 = vadd.f32 1.0, %v285_v25 }
  0x6e   : > { %v297_v30 = vand.u32 2147483647, %v632_v22  ;;  %vm993_vm2 = vcmp.lt.f32.partialorder %v288_v28, 0.0004427343 }
  0x6f   : > { %635 = vlog2.f32 %v291_v24  ;;  %v295_v29 = vadd.f32 1.0, %v294_v26  ;;  %v287_v31 = vmul.f32 %v630_v21, %v286_v27 }
  0x70   : > { %637 = vrcp.f32 %v282_v23  ;;  %vm298_vm3 = vcmp.lt.f32.partialorder %v297_v30, 0.0004427343 }
  0x71   : > { %639 = vrcp.f32 %v291_v24  ;;  %v296_v35 = vmul.f32 %v632_v22, %v295_v29 }
  0x77   : > { %v634_v32 = vpop.eup %633 }
  0x78   : > { %v284_v38 = vmul.f32 0.6931472, %v634_v32 }
  0x79   : > { %v636_v36 = vpop.eup %635 }
  0x7a   : > { %v638_v39 = vpop.eup %637  ;;  %v293_v40 = vmul.f32 0.6931472, %v636_v36  ;;  %v290_v43 = vsel %vm993_vm2, %v287_v31, %v284_v38 }
  0x7b   : > { %v640_v42 = vpop.eup %639  ;;  %v312_v45 = vmul.f32 %v638_v39, %v630_v21  ;;  %v300_v47 = vadd.f32 %v290_v43, %v280_v33 }
  0x7c   : > { %v299_v46 = vsel %vm298_vm3, %v296_v35, %v293_v40  ;;  %v313_v49 = vmul.f32 %v640_v42, %v632_v22 }
  0x7d   : > { %v301_v50 = vadd.f32 %v299_v46, %v281_v37  ;;  %v314_v52 = vsel %vm310_vm4, %v638_v39, %v312_v45  ;;  %v318_v53 = vsub.f32 %v300_v47, %v316_v41  ;;  %v302_v54 = vsub.f32 %v300_v47, %v268_v10 }
  0x7e   : > { %v326_v55 = vmin.f32 %v300_v47, 100.0  ;;  %v315_v56 = vsel %vm311_vm5, %v640_v42, %v313_v49  ;;  %v346_v60 = vmul.f32 %v314_v52, %v984_v14 }
  0x7f   : > { %v319_v57 = vsub.f32 %v301_v50, %v317_v44  ;;  %v303_v58 = vsub.f32 %v301_v50, %v981_v11  ;;  %v327_v59 = vmin.f32 %v301_v50, 100.0  ;;  %v320_v61 = vmin.f32 %v302_v54, 100.0 }
  0x80   : > { %v328_v62 = vmul.f32 %v326_v55, %v324_v48  ;;  %v347_v63 = vmul.f32 %v315_v56, %v986_v15  ;;  %v383_v0 = vadd.f32 %v315_v56, %v314_v52 }
  0x81   : > { %v369_v1 = vadd.f32 %v319_v57, %v318_v53  ;;  %v321_v2 = vmin.f32 %v303_v58, 100.0  ;;  %v329_v3 = vmul.f32 %v327_v59, %v325_v51  ;;  %v322_v4 = vmul.f32 %v320_v61, %v984_v14 }
  0x82   : > { %v378_v5 = vadd.f32 %v347_v63, %v346_v60  ;;  %525 = vst [vmem:[%s990_s21 + $0x18] sm:$0xff] %v383_v0 }
  0x83   : > { %370 = vst [vmem:[%s990_s21] sm:$0xff] %v369_v1  ;;  %v323_v6 = vmul.f32 %v321_v2, %v986_v15  ;;  %v330_v7 = vadd.f32 %v328_v62, %v322_v4 }
  0x84   : > { %524 = vst [vmem:[%s990_s21 + $0x10] sm:$0xff] %v378_v5 }
  0x85   : > { %v331_v8 = vadd.f32 %v329_v3, %v323_v6 }
  0x87   : > { %v373_v9 = vadd.f32 %v331_v8, %v330_v7 }
  0x89   : > { %523 = vst [vmem:[%s990_s21 + $0x8] sm:$0xff] %v373_v9 }
  0x8a   : > { %714 = shalt.err (!%p711_p7)
}
  0x8b   : > { %s715_s6 = scalar_lea.hbm %s1021_s22, 640  ;;  %s719_s8 = scalar_lea.hbm %s1080_s2, 1280 }
  0x8c   : > { %p716_p13 = scmp.ne.s32.totalorder %s1021_s22, %s715_s6  ;;  %p720_p12 = scmp.lt.u32.totalorder %s1021_s22, %s1080_s2 }
  0x8d   : > { %p721_p0 = scmp.lt.u32.totalorder %s719_s8, %s715_s6  ;;  %p723_p2 = scmp.lt.u32.totalorder %s715_s6, %s1021_s22 }
  0x8e   : > { %p717_p4 = pnand %p716_p13, %p1093_p8 }
  0x8f   : > { %p722_p5 = por %p721_p0, %p720_p12 }
  0x90   : > { %p718_p6 = pneg %p717_p4 }
  0x91   : > { %p724_p9 = por %p723_p2, %p722_p5 }
  0x93   : > { %p725_p10 = pnand %p724_p9, %p718_p6 }
  0x95   : > { %728 = shalt.err (!%p725_p10)
}
  0x96   : > { %s815_s27 = smov 128   ;;  %s816_s21 = smov 8  }
  0x97   : > { %538 = dma.vmem_to_hbm [thread:$0]  (%p1093_p8), %s1016_s28, 640, %s1021_s22, %s1026_s23, %s815_s27, %s815_s27, %s816_s21  }
  0x98 PF: > { %s420_s3 = sand.u32 1, %s780_s9   ;;  %p1094_p11 = scmp.ne.s32.totalorder %s1086_s26, 0 }
  0x99   : > { %p1095_p1 = scmp.ge.s32.totalorder %s808_s16, 2  ;;  %s421_s12 = scalar_lea.sflag [#allocation9], %s420_s3 }
  0x9b   : > { %p548_p3 = pnand %p1095_p1, %p1094_p11 }
  0x9d   : > { %774 = dma.done.wait (!%p548_p3), %s421_s12, 640  }
  0x9e   : > { %776 = vsyncadd (!%p548_p3), %s421_s12, 4294966656  ;;  %s21_s16 = sadd.s32 1, %s808_s16   ;;  %s1096_s9 = smov %s784_s10 }
  0x9f   : > { %p18_p7 = scmp.ge.s32.totalorder %s21_s16, 4   ;;  %s1097_s10 = smov %s788_s11 }
  0xa0   : > { %s1098_s11 = smov %s890_s24  ;;  %s1099_s12 = smov %s796_s13 }
  0xa1   : > { %s1068_s13 = smov 0   ;;  %s1100_s14 = smov %s804_s15 }
  0xa2   : > { %s1101_s15 = smov %s1103_s19  ;;  %20 = sbr.rel (!%p18_p7) target bundleno = 9 (0x9), region = 98 }
  0xa9   :  { %426 = vsyncpa [#allocation8], 1 }
  0xaa   :  { %428 = vsyncpa [#allocation8 + $0x1], 1 }
  0xab   :  { %429 = vsyncpa [#allocation11], 1 }
  0xac   :  { %431 = vsyncpa [#allocation11 + $0x1], 1 }
  0xad   :  { %432 = vsyncpa [#allocation9], 1 }
  0xae   :  { %434 = vsyncpa [#allocation9 + $0x1], 1 }

</bundles_post_ra>
